<compile_context>
chip_gen: v6e
topology: v6e:2x2x1
jax: 0.10.0
libtpu: 0.0.40
codegen_flags: <defaults>
</compile_context>

<pallas_src>
import math

import jax
import jax.numpy as jnp
from jax.experimental import pallas as pl
from jax.experimental.pallas import tpu as pltpu

LANE = 128   # lane width
SUB = 8      # sublane width


def _round_up(x, m):
    return ((x + m - 1) // m) * m


# ----------------------------- fused Pallas kernel -----------------------------

def _srgnn_fused_kernel(
    # SMEM index tables / scalars
    gidx_ref,    # [T_pad] int32 : row of `gated` for each flattened session position
    seg_ref,     # [T_pad] int32 : session id per position (padded entries clamped to 0)
    last_ref,    # [S_pad] int32 : row of `gated` holding each session's last item
    qb_ref,      # [1]     f32   : bias of the q projection
    # VMEM operands
    a_ref,       # [N_pad, N_pad] bf16 : GCN-normalized adjacency
    x_ref,       # [N_pad, D_pad] bf16 : node features
    wg_ref,      # [D_pad, D_pad] bf16 : SGConv weight (in, out)
    bg_ref,      # [1, D_pad]     f32
    w1_ref,      # [D_pad, H_pad] bf16 : W1.T  (consumes v_n, hoisted to session domain)
    w2_ref,      # [D_pad, H_pad] bf16 : W2.T  (consumes rebuilt-session rows)
    b12_ref,     # [1, H_pad]     f32  : b1 + b2
    qw_ref,      # [1, H_pad]     f32  : q weight row
    w3a_ref,     # [D_pad, H_pad] bf16 : W3[:, :D].T  (v_n half)
    w3b_ref,     # [D_pad, H_pad] bf16 : W3[:, D:].T  (s_g half)
    b3_ref,      # [1, H_pad]     f32
    segrow_ref,  # [1, T_pad]     int32 : seg ids, padded entries = S_pad sentinel
    # output
    o_ref,       # [S_pad, H_pad] f32 : h_s (lane-dense)
    # VMEM scratch
    gated_sc,    # [N_pad, D_pad] f32
    hid_sc,      # [T_pad, D_pad] f32
    vn_sc,       # [S_pad, D_pad] f32
    w1vn_sc,     # [S_pad, H_pad] f32
    w1pos_sc,    # [T_pad, H_pad] f32
):
    f32 = jnp.float32
    bf16 = jnp.bfloat16
    S_pad = vn_sc.shape[0]
    T_pad = hid_sc.shape[0]

    # ---- SGConv (K=2): gated = A_hat @ (A_hat @ X) @ Wg + bg  (bf16 MXU, f32 accumulation)
    h = jnp.dot(a_ref[...], x_ref[...], preferred_element_type=f32)
    h = jnp.dot(a_ref[...], h.astype(bf16), preferred_element_type=f32)
    gated_sc[...] = (
        jnp.dot(h.astype(bf16), wg_ref[...], preferred_element_type=f32) + bg_ref[...]
    )

    # ---- v_n per session: counted gather loop, index read from SMEM each iteration.
    def vn_body(s, carry):
        vn_sc[pl.ds(s, 1), :] = gated_sc[pl.ds(last_ref[s], 1), :]
        return carry

    jax.lax.fori_loop(0, S_pad, vn_body, 0, unroll=8)

    # ---- W_1 contribution hoisted out of the per-position domain: one [S,D]@[D,H] dot.
    w1vn_sc[...] = jnp.dot(vn_sc[...].astype(bf16), w1_ref[...],
                           preferred_element_type=f32)

    # ---- per-position gathers: rebuilt-session rows (width D) + per-session W1 row (width H).
    def pos_body(t, carry):
        hid_sc[pl.ds(t, 1), :] = gated_sc[pl.ds(gidx_ref[t], 1), :]
        w1pos_sc[pl.ds(t, 1), :] = w1vn_sc[pl.ds(seg_ref[t], 1), :]
        return carry

    jax.lax.fori_loop(0, T_pad, pos_body, 0, unroll=8)

    hid = hid_sc[...]

    # ---- attention gate: two un-concatenated dots (W1 half already per-session).
    pre = (
        w1pos_sc[...]
        + jnp.dot(hid.astype(bf16), w2_ref[...], preferred_element_type=f32)
        + b12_ref[...]
    )
    gate = jax.nn.sigmoid(pre)                                           # f32; padded H cols masked by qw=0
    alpha = jnp.sum(gate * qw_ref[...], axis=-1, keepdims=True) + qb_ref[0]   # [T_pad, 1]

    # ---- segment sum via in-kernel membership one-hot built from the seg row.
    #      Padded positions hold the sentinel S_pad, so they never match any session.
    iota_s = jax.lax.broadcasted_iota(jnp.int32, (S_pad, T_pad), 0)
    mem_bf = jnp.where(segrow_ref[...] == iota_s,
                       jnp.float32(1), jnp.float32(0)).astype(bf16)      # [S_pad, T_pad]
    sgw = alpha * hid                                                    # keep gate scaling in f32
    sg = jnp.dot(mem_bf, sgw.astype(bf16), preferred_element_type=f32)   # [S_pad, D_pad]

    # ---- readout: W3 split into its (v_n | s_g) halves -> two dots, no lane concat.
    o_ref[...] = (
        jnp.dot(vn_sc[...].astype(bf16), w3a_ref[...], preferred_element_type=f32)
        + jnp.dot(sg.astype(bf16), w3b_ref[...], preferred_element_type=f32)
        + b3_ref[...]
    )


# ----------------------------- wrapper -----------------------------

def srgnn_forward(a_norm, hidden, global_idx, seg_ids, last_gidx,
                  Wg, bg, W1, b1, W2, b2, Wq, bq, W3, b3):
    """Fused SRGNN forward (SGConv K=2 + get_h_s) in a single pallas_call.

    Weights use the nn.Linear (out, in) convention; padding / transposition / splitting is
    done here so the kernel sees lane-aligned (in, out) operands.
    """
    N, D = hidden.shape
    T = int(global_idx.shape[0])
    S = int(last_gidx.shape[0])
    H = int(W1.shape[0])

    N_pad = _round_up(N, SUB)
    T_pad = _round_up(T, SUB)
    S_pad = _round_up(S, SUB)
    D_pad = _round_up(max(D, LANE), LANE)
    H_pad = _round_up(max(H, LANE), LANE)

    f32, bf16, i32 = jnp.float32, jnp.bfloat16, jnp.int32

    def pad2(x, r, c, dtype):
        out = jnp.zeros((r, c), dtype)
        return out.at[: x.shape[0], : x.shape[1]].set(x.astype(dtype))

    def pad1(x, n, dtype, fill=0):
        out = jnp.full((n,), fill, dtype)
        return out.at[: x.shape[0]].set(x.astype(dtype))

    # Lane-aligned MXU operands already in bf16 (A_hat is the largest one); gate math,
    # biases and the q row stay f32.
    a_p = pad2(a_norm, N_pad, N_pad, bf16)
    x_p = pad2(hidden, N_pad, D_pad, bf16)
    wg_p = pad2(Wg.T, D_pad, D_pad, bf16)                      # (in, out)
    bg_p = pad2(bg.reshape(1, -1), 1, D_pad, f32)

    w1_p = pad2(W1.T, D_pad, H_pad, bf16)                      # consumes v_n (per session)
    w2_p = pad2(W2.T, D_pad, H_pad, bf16)                      # consumes rebuilt-session rows
    b12_p = pad2((b1 + b2).reshape(1, -1), 1, H_pad, f32)

    qw_p = pad2(Wq.reshape(1, -1), 1, H_pad, f32)
    qb_p = bq.reshape(1).astype(f32)

    w3a_p = pad2(W3[:, :D].T, D_pad, H_pad, bf16)              # v_n half
    w3b_p = pad2(W3[:, D:].T, D_pad, H_pad, bf16)              # s_g half
    b3_p = pad2(b3.reshape(1, -1), 1, H_pad, f32)

    # Index tables. SMEM copies clamp padded entries to row 0 (always in-bounds for the
    # dynamic-slice gathers); the VMEM seg row carries the sentinel S_pad so padded
    # positions never match any session in the in-kernel membership one-hot.
    gidx_p = pad1(global_idx, T_pad, i32, fill=0)
    seg_p = pad1(seg_ids, T_pad, i32, fill=0)
    last_p = pad1(last_gidx, S_pad, i32, fill=0)
    segrow_p = pad1(seg_ids, T_pad, i32, fill=S_pad).reshape(1, T_pad)

    smem = pl.BlockSpec(memory_space=pltpu.MemorySpace.SMEM)
    vmem = pl.BlockSpec(memory_space=pltpu.MemorySpace.VMEM)

    vmem_inputs = (a_p, x_p, wg_p, bg_p, w1_p, w2_p, b12_p, qw_p,
                   w3a_p, w3b_p, b3_p, segrow_p)
    in_bytes = sum(int(v.size) * v.dtype.itemsize for v in vmem_inputs)
    out_bytes = S_pad * H_pad * 4
    scratch_bytes = 4 * (N_pad * D_pad + T_pad * D_pad + S_pad * D_pad
                         + S_pad * H_pad + T_pad * H_pad)
    # Explicit scoped-VMEM limit derived from actual buffer sizes (never below the 32 MiB
    # default, capped at v7x's 64 MiB physical VMEM).
    vmem_limit = int(min(64 * 2 ** 20,
                         max(32 * 2 ** 20,
                             2 * (in_bytes + out_bytes) + scratch_bytes + (1 << 20))))

    flops = 2 * (2 * N_pad * N_pad * D_pad          # two A_hat hops
                 + N_pad * D_pad * D_pad            # X @ Wg
                 + S_pad * D_pad * H_pad            # v_n @ W1
                 + T_pad * D_pad * H_pad            # hid @ W2
                 + S_pad * T_pad * D_pad            # segment-sum matmul
                 + 2 * S_pad * D_pad * H_pad)       # two W3 halves
    cost = pl.CostEstimate(flops=flops,
                           transcendentals=T_pad * H_pad,
                           bytes_accessed=in_bytes + out_bytes)

    out = pl.pallas_call(
        _srgnn_fused_kernel,
        out_shape=jax.ShapeDtypeStruct((S_pad, H_pad), f32),
        in_specs=[smem] * 4 + [vmem] * 12,
        out_specs=vmem,
        scratch_shapes=[
            pltpu.VMEM((N_pad, D_pad), f32),   # gated node features
            pltpu.VMEM((T_pad, D_pad), f32),   # rebuilt-session rows
            pltpu.VMEM((S_pad, D_pad), f32),   # v_n per session
            pltpu.VMEM((S_pad, H_pad), f32),   # W1 @ v_n (per session)
            pltpu.VMEM((T_pad, H_pad), f32),   # W1 @ v_n gathered per position
        ],
        compiler_params=pltpu.CompilerParams(vmem_limit_bytes=vmem_limit),
        cost_estimate=cost,
    )(gidx_p, seg_p, last_p, qb_p, *vmem_inputs)

    return out[:S, :H]


# ----------------------------- glue (plain JAX) -----------------------------

def gcn_norm_dense(edge_index, num_nodes):
    """Dense GCN normalization with self-loops (PyG gcn_norm semantics)."""
    src, dst = edge_index[0], edge_index[1]
    A = jnp.zeros((num_nodes, num_nodes), jnp.float32).at[dst, src].add(1.0)
    A = A + jnp.eye(num_nodes, dtype=jnp.float32)          # add self-loops
    deg = jnp.sum(A, axis=1)
    dinv = jax.lax.rsqrt(deg)
    return dinv[:, None] * A * dinv[None, :]


# ----------------------------- main -----------------------------

if __name__ == "__main__":
    H = 4            # hidden_size
    D = 8 * H        # node feature dim (heads = 8)
    n_node = 50      # item vocabulary (embedding table unused in this forward)

    key = jax.random.PRNGKey(0)
    keys = jax.random.split(key, 12)
    stdv = 1.0 / math.sqrt(H)
    u = lambda k, shape: jax.random.uniform(k, shape, jnp.float32, -stdv, stdv)

    # parameters (nn.Linear convention: weight is (out, in))
    Wg = u(keys[0], (D, D));     bg = u(keys[1], (D,))      # SGConv.lin  (D -> D)
    W1 = u(keys[2], (H, D));     b1 = u(keys[3], (H,))      # W_1: 8H -> H
    W2 = u(keys[4], (H, D));     b2 = u(keys[5], (H,))      # W_2: 8H -> H
    Wq = u(keys[6], (1, H));     bq = u(keys[7], (1,))      # q:   H  -> 1
    W3 = u(keys[8], (H, 2 * D)); b3 = u(keys[9], (H,))      # W_3: 16H -> H

    # Synthetic batched session graph, 2 sessions:
    #   session 0 items [5,3,5,7] -> unique nodes (global ids 0,1,2)
    #   session 1 items [2,9,2]   -> unique nodes (global ids 3,4)
    N = 5
    edge_index = jnp.array([[0, 1, 0, 3, 4],
                            [1, 0, 2, 4, 3]], dtype=jnp.int32)      # [2, E]
    batch = jnp.array([0, 0, 0, 1, 1], dtype=jnp.int32)             # node -> session
    seq_len = jnp.array([4, 3], dtype=jnp.int32)
    sess_item_index = jnp.array([0, 1, 0, 2, 0, 1, 0], dtype=jnp.int32)  # local node ids
    hidden = u(keys[10], (N, D))                                    # node features [N, D]

    # normalized adjacency (index/scatter glue)
    A_norm = gcn_norm_dense(edge_index, N)

    # ragged rebuilt_sess -> flat gather index tables (index arithmetic glue)
    S = int(seq_len.shape[0])
    T = int(sess_item_index.shape[0])
    sections = jnp.bincount(batch, length=S).astype(jnp.int32)
    sess_offsets = jnp.concatenate(
        [jnp.zeros((1,), jnp.int32), jnp.cumsum(sections)[:-1].astype(jnp.int32)])
    seg_ids = jnp.repeat(jnp.arange(S, dtype=jnp.int32), seq_len, total_repeat_length=T)
    global_idx = sess_offsets[seg_ids] + sess_item_index            # gated row per position
    last_pos = jnp.cumsum(seq_len) - 1
    last_gidx = global_idx[last_pos]                                # gated row of each v_n

    # fused SGConv + attention readout (single Pallas kernel)
    h_s = srgnn_forward(A_norm, hidden, global_idx, seg_ids, last_gidx,
                        Wg, bg, W1, b1, W2, b2, Wq, bq, W3, b3)     # [S, H]

    jax.block_until_ready(h_s)
    assert h_s.shape == (S, H)
    print("KERNEL_OK")
</pallas_src>

<mosaic_0001>
module attributes {stable_mosaic.version = 11 : i64} {
  func.func @_srgnn_fused_kernel(%arg0: memref<8xi32, #tpu.memory_space<smem>>, %arg1: memref<8xi32, #tpu.memory_space<smem>>, %arg2: memref<8xi32, #tpu.memory_space<smem>>, %arg3: memref<1xf32, #tpu.memory_space<smem>>, %arg4: memref<8x8xbf16, #tpu.memory_space<vmem>>, %arg5: memref<8x128xbf16, #tpu.memory_space<vmem>>, %arg6: memref<128x128xbf16, #tpu.memory_space<vmem>>, %arg7: memref<1x128xf32, #tpu.memory_space<vmem>>, %arg8: memref<128x128xbf16, #tpu.memory_space<vmem>>, %arg9: memref<128x128xbf16, #tpu.memory_space<vmem>>, %arg10: memref<1x128xf32, #tpu.memory_space<vmem>>, %arg11: memref<1x128xf32, #tpu.memory_space<vmem>>, %arg12: memref<128x128xbf16, #tpu.memory_space<vmem>>, %arg13: memref<128x128xbf16, #tpu.memory_space<vmem>>, %arg14: memref<1x128xf32, #tpu.memory_space<vmem>>, %arg15: memref<1x8xi32, #tpu.memory_space<vmem>>, %arg16: memref<8x128xf32, #tpu.memory_space<vmem>>, %arg17: memref<8x128xf32, #tpu.memory_space<vmem>>, %arg18: memref<8x128xf32, #tpu.memory_space<vmem>>, %arg19: memref<8x128xf32, #tpu.memory_space<vmem>>, %arg20: memref<8x128xf32, #tpu.memory_space<vmem>>, %arg21: memref<8x128xf32, #tpu.memory_space<vmem>>) attributes {dimension_semantics = [], scalar_prefetch = 0 : i64, scratch_operands = 5 : i64, tpu.core_type = #tpu.core_type<tc>} {
    %c0 = arith.constant 0 : index
    %c0_0 = arith.constant 0 : index
    %0 = vector.load %arg4[%c0, %c0_0] : memref<8x8xbf16, #tpu.memory_space<vmem>>, vector<8x8xbf16>
    %c0_1 = arith.constant 0 : index
    %c0_2 = arith.constant 0 : index
    %1 = vector.load %arg5[%c0_1, %c0_2] : memref<8x128xbf16, #tpu.memory_space<vmem>>, vector<8x128xbf16>
    %cst = arith.constant dense<0.000000e+00> : vector<8x128xf32>
    %2 = tpu.matmul %0, %1, %cst {dimension_numbers = #tpu.dot_dimension_numbers<[1], [0], [0], [1], [0, 0, 1, 1], [], []>} : vector<8x8xbf16>, vector<8x128xbf16>, vector<8x128xf32> -> vector<8x128xf32>
    %c0_3 = arith.constant 0 : index
    %c0_4 = arith.constant 0 : index
    %3 = vector.load %arg4[%c0_3, %c0_4] : memref<8x8xbf16, #tpu.memory_space<vmem>>, vector<8x8xbf16>
    %4 = arith.truncf %2 : vector<8x128xf32> to vector<8x128xbf16>
    %cst_5 = arith.constant dense<0.000000e+00> : vector<8x128xf32>
    %5 = tpu.matmul %3, %4, %cst_5 {dimension_numbers = #tpu.dot_dimension_numbers<[1], [0], [0], [1], [0, 0, 1, 1], [], []>} : vector<8x8xbf16>, vector<8x128xbf16>, vector<8x128xf32> -> vector<8x128xf32>
    %6 = arith.truncf %5 : vector<8x128xf32> to vector<8x128xbf16>
    %c0_6 = arith.constant 0 : index
    %c0_7 = arith.constant 0 : index
    %7 = vector.load %arg6[%c0_6, %c0_7] : memref<128x128xbf16, #tpu.memory_space<vmem>>, vector<128x128xbf16>
    %cst_8 = arith.constant dense<0.000000e+00> : vector<8x128xf32>
    %8 = tpu.matmul %6, %7, %cst_8 {dimension_numbers = #tpu.dot_dimension_numbers<[1], [0], [0], [1], [0, 0, 1, 1], [], []>} : vector<8x128xbf16>, vector<128x128xbf16>, vector<8x128xf32> -> vector<8x128xf32>
    %c0_9 = arith.constant 0 : index
    %c0_10 = arith.constant 0 : index
    %9 = vector.load %arg7[%c0_9, %c0_10] : memref<1x128xf32, #tpu.memory_space<vmem>>, vector<1x128xf32>
    %10 = vector.broadcast %9 : vector<1x128xf32> to vector<8x128xf32>
    %11 = arith.addf %8, %10 : vector<8x128xf32>
    %c0_11 = arith.constant 0 : index
    %c0_12 = arith.constant 0 : index
    %12 = vector.load %arg17[%c0_11, %c0_12] : memref<8x128xf32, #tpu.memory_space<vmem>>, vector<8x128xf32>
    tpu.vector_store %arg17[%c0_11, %c0_12], %11 {strides = array<i32>} : memref<8x128xf32, #tpu.memory_space<vmem>>, vector<8x128xf32>,
    %c0_i32 = arith.constant 0 : i32
    %13 = arith.index_cast %c0_i32 : i32 to index
    %14 = memref.load %arg2[%13] : memref<8xi32, #tpu.memory_space<smem>>
    %15 = arith.index_cast %14 : i32 to index
    %c0_13 = arith.constant 0 : index
    %16 = vector.load %arg17[%15, %c0_13] : memref<8x128xf32, #tpu.memory_space<vmem>>, vector<1x128xf32>
    %17 = arith.index_cast %c0_i32 : i32 to index
    %c0_14 = arith.constant 0 : index
    %18 = vector.load %arg19[%17, %c0_14] : memref<8x128xf32, #tpu.memory_space<vmem>>, vector<1x128xf32>
    tpu.vector_store %arg19[%17, %c0_14], %16 {strides = array<i32>} : memref<8x128xf32, #tpu.memory_space<vmem>>, vector<1x128xf32>,
    %c1_i32 = arith.constant 1 : i32
    %19 = arith.index_cast %c1_i32 : i32 to index
    %20 = memref.load %arg2[%19] : memref<8xi32, #tpu.memory_space<smem>>
    %21 = arith.index_cast %20 : i32 to index
    %c0_15 = arith.constant 0 : index
    %22 = vector.load %arg17[%21, %c0_15] : memref<8x128xf32, #tpu.memory_space<vmem>>, vector<1x128xf32>
    %23 = arith.index_cast %c1_i32 : i32 to index
    %c0_16 = arith.constant 0 : index
    %24 = vector.load %arg19[%23, %c0_16] : memref<8x128xf32, #tpu.memory_space<vmem>>, vector<1x128xf32>
    tpu.vector_store %arg19[%23, %c0_16], %22 {strides = array<i32>} : memref<8x128xf32, #tpu.memory_space<vmem>>, vector<1x128xf32>,
    %c2_i32 = arith.constant 2 : i32
    %25 = arith.index_cast %c2_i32 : i32 to index
    %26 = memref.load %arg2[%25] : memref<8xi32, #tpu.memory_space<smem>>
    %27 = arith.index_cast %26 : i32 to index
    %c0_17 = arith.constant 0 : index
    %28 = vector.load %arg17[%27, %c0_17] : memref<8x128xf32, #tpu.memory_space<vmem>>, vector<1x128xf32>
    %29 = arith.index_cast %c2_i32 : i32 to index
    %c0_18 = arith.constant 0 : index
    %30 = vector.load %arg19[%29, %c0_18] : memref<8x128xf32, #tpu.memory_space<vmem>>, vector<1x128xf32>
    tpu.vector_store %arg19[%29, %c0_18], %28 {strides = array<i32>} : memref<8x128xf32, #tpu.memory_space<vmem>>, vector<1x128xf32>,
    %c3_i32 = arith.constant 3 : i32
    %31 = arith.index_cast %c3_i32 : i32 to index
    %32 = memref.load %arg2[%31] : memref<8xi32, #tpu.memory_space<smem>>
    %33 = arith.index_cast %32 : i32 to index
    %c0_19 = arith.constant 0 : index
    %34 = vector.load %arg17[%33, %c0_19] : memref<8x128xf32, #tpu.memory_space<vmem>>, vector<1x128xf32>
    %35 = arith.index_cast %c3_i32 : i32 to index
    %c0_20 = arith.constant 0 : index
    %36 = vector.load %arg19[%35, %c0_20] : memref<8x128xf32, #tpu.memory_space<vmem>>, vector<1x128xf32>
    tpu.vector_store %arg19[%35, %c0_20], %34 {strides = array<i32>} : memref<8x128xf32, #tpu.memory_space<vmem>>, vector<1x128xf32>,
    %c4_i32 = arith.constant 4 : i32
    %37 = arith.index_cast %c4_i32 : i32 to index
    %38 = memref.load %arg2[%37] : memref<8xi32, #tpu.memory_space<smem>>
    %39 = arith.index_cast %38 : i32 to index
    %c0_21 = arith.constant 0 : index
    %40 = vector.load %arg17[%39, %c0_21] : memref<8x128xf32, #tpu.memory_space<vmem>>, vector<1x128xf32>
    %41 = arith.index_cast %c4_i32 : i32 to index
    %c0_22 = arith.constant 0 : index
    %42 = vector.load %arg19[%41, %c0_22] : memref<8x128xf32, #tpu.memory_space<vmem>>, vector<1x128xf32>
    tpu.vector_store %arg19[%41, %c0_22], %40 {strides = array<i32>} : memref<8x128xf32, #tpu.memory_space<vmem>>, vector<1x128xf32>,
    %c5_i32 = arith.constant 5 : i32
    %43 = arith.index_cast %c5_i32 : i32 to index
    %44 = memref.load %arg2[%43] : memref<8xi32, #tpu.memory_space<smem>>
    %45 = arith.index_cast %44 : i32 to index
    %c0_23 = arith.constant 0 : index
    %46 = vector.load %arg17[%45, %c0_23] : memref<8x128xf32, #tpu.memory_space<vmem>>, vector<1x128xf32>
    %47 = arith.index_cast %c5_i32 : i32 to index
    %c0_24 = arith.constant 0 : index
    %48 = vector.load %arg19[%47, %c0_24] : memref<8x128xf32, #tpu.memory_space<vmem>>, vector<1x128xf32>
    tpu.vector_store %arg19[%47, %c0_24], %46 {strides = array<i32>} : memref<8x128xf32, #tpu.memory_space<vmem>>, vector<1x128xf32>,
    %c6_i32 = arith.constant 6 : i32
    %49 = arith.index_cast %c6_i32 : i32 to index
    %50 = memref.load %arg2[%49] : memref<8xi32, #tpu.memory_space<smem>>
    %51 = arith.index_cast %50 : i32 to index
    %c0_25 = arith.constant 0 : index
    %52 = vector.load %arg17[%51, %c0_25] : memref<8x128xf32, #tpu.memory_space<vmem>>, vector<1x128xf32>
    %53 = arith.index_cast %c6_i32 : i32 to index
    %c0_26 = arith.constant 0 : index
    %54 = vector.load %arg19[%53, %c0_26] : memref<8x128xf32, #tpu.memory_space<vmem>>, vector<1x128xf32>
    tpu.vector_store %arg19[%53, %c0_26], %52 {strides = array<i32>} : memref<8x128xf32, #tpu.memory_space<vmem>>, vector<1x128xf32>,
    %c7_i32 = arith.constant 7 : i32
    %55 = arith.index_cast %c7_i32 : i32 to index
    %56 = memref.load %arg2[%55] : memref<8xi32, #tpu.memory_space<smem>>
    %57 = arith.index_cast %56 : i32 to index
    %c0_27 = arith.constant 0 : index
    %58 = vector.load %arg17[%57, %c0_27] : memref<8x128xf32, #tpu.memory_space<vmem>>, vector<1x128xf32>
    %59 = arith.index_cast %c7_i32 : i32 to index
    %c0_28 = arith.constant 0 : index
    %60 = vector.load %arg19[%59, %c0_28] : memref<8x128xf32, #tpu.memory_space<vmem>>, vector<1x128xf32>
    tpu.vector_store %arg19[%59, %c0_28], %58 {strides = array<i32>} : memref<8x128xf32, #tpu.memory_space<vmem>>, vector<1x128xf32>,
    %c8_i32 = arith.constant 8 : i32
    %c0_29 = arith.constant 0 : index
    %c0_30 = arith.constant 0 : index
    %61 = vector.load %arg19[%c0_29, %c0_30] : memref<8x128xf32, #tpu.memory_space<vmem>>, vector<8x128xf32>
    %62 = arith.truncf %61 : vector<8x128xf32> to vector<8x128xbf16>
    %c0_31 = arith.constant 0 : index
    %c0_32 = arith.constant 0 : index
    %63 = vector.load %arg8[%c0_31, %c0_32] : memref<128x128xbf16, #tpu.memory_space<vmem>>, vector<128x128xbf16>
    %cst_33 = arith.constant dense<0.000000e+00> : vector<8x128xf32>
    %64 = tpu.matmul %62, %63, %cst_33 {dimension_numbers = #tpu.dot_dimension_numbers<[1], [0], [0], [1], [0, 0, 1, 1], [], []>} : vector<8x128xbf16>, vector<128x128xbf16>, vector<8x128xf32> -> vector<8x128xf32>
    %c0_34 = arith.constant 0 : index
    %c0_35 = arith.constant 0 : index
    %65 = vector.load %arg20[%c0_34, %c0_35] : memref<8x128xf32, #tpu.memory_space<vmem>>, vector<8x128xf32>
    tpu.vector_store %arg20[%c0_34, %c0_35], %64 {strides = array<i32>} : memref<8x128xf32, #tpu.memory_space<vmem>>, vector<8x128xf32>,
    %c0_i32_36 = arith.constant 0 : i32
    %66 = arith.index_cast %c0_i32_36 : i32 to index
    %67 = memref.load %arg0[%66] : memref<8xi32, #tpu.memory_space<smem>>
    %68 = arith.index_cast %67 : i32 to index
    %c0_37 = arith.constant 0 : index
    %69 = vector.load %arg17[%68, %c0_37] : memref<8x128xf32, #tpu.memory_space<vmem>>, vector<1x128xf32>
    %70 = arith.index_cast %c0_i32_36 : i32 to index
    %c0_38 = arith.constant 0 : index
    %71 = vector.load %arg18[%70, %c0_38] : memref<8x128xf32, #tpu.memory_space<vmem>>, vector<1x128xf32>
    tpu.vector_store %arg18[%70, %c0_38], %69 {strides = array<i32>} : memref<8x128xf32, #tpu.memory_space<vmem>>, vector<1x128xf32>,
    %72 = arith.index_cast %c0_i32_36 : i32 to index
    %73 = memref.load %arg1[%72] : memref<8xi32, #tpu.memory_space<smem>>
    %74 = arith.index_cast %73 : i32 to index
    %c0_39 = arith.constant 0 : index
    %75 = vector.load %arg20[%74, %c0_39] : memref<8x128xf32, #tpu.memory_space<vmem>>, vector<1x128xf32>
    %76 = arith.index_cast %c0_i32_36 : i32 to index
    %c0_40 = arith.constant 0 : index
    %77 = vector.load %arg21[%76, %c0_40] : memref<8x128xf32, #tpu.memory_space<vmem>>, vector<1x128xf32>
    tpu.vector_store %arg21[%76, %c0_40], %75 {strides = array<i32>} : memref<8x128xf32, #tpu.memory_space<vmem>>, vector<1x128xf32>,
    %c1_i32_41 = arith.constant 1 : i32
    %78 = arith.index_cast %c1_i32_41 : i32 to index
    %79 = memref.load %arg0[%78] : memref<8xi32, #tpu.memory_space<smem>>
    %80 = arith.index_cast %79 : i32 to index
    %c0_42 = arith.constant 0 : index
    %81 = vector.load %arg17[%80, %c0_42] : memref<8x128xf32, #tpu.memory_space<vmem>>, vector<1x128xf32>
    %82 = arith.index_cast %c1_i32_41 : i32 to index
    %c0_43 = arith.constant 0 : index
    %83 = vector.load %arg18[%82, %c0_43] : memref<8x128xf32, #tpu.memory_space<vmem>>, vector<1x128xf32>
    tpu.vector_store %arg18[%82, %c0_43], %81 {strides = array<i32>} : memref<8x128xf32, #tpu.memory_space<vmem>>, vector<1x128xf32>,
    %84 = arith.index_cast %c1_i32_41 : i32 to index
    %85 = memref.load %arg1[%84] : memref<8xi32, #tpu.memory_space<smem>>
    %86 = arith.index_cast %85 : i32 to index
    %c0_44 = arith.constant 0 : index
    %87 = vector.load %arg20[%86, %c0_44] : memref<8x128xf32, #tpu.memory_space<vmem>>, vector<1x128xf32>
    %88 = arith.index_cast %c1_i32_41 : i32 to index
    %c0_45 = arith.constant 0 : index
    %89 = vector.load %arg21[%88, %c0_45] : memref<8x128xf32, #tpu.memory_space<vmem>>, vector<1x128xf32>
    tpu.vector_store %arg21[%88, %c0_45], %87 {strides = array<i32>} : memref<8x128xf32, #tpu.memory_space<vmem>>, vector<1x128xf32>,
    %c2_i32_46 = arith.constant 2 : i32
    %90 = arith.index_cast %c2_i32_46 : i32 to index
    %91 = memref.load %arg0[%90] : memref<8xi32, #tpu.memory_space<smem>>
    %92 = arith.index_cast %91 : i32 to index
    %c0_47 = arith.constant 0 : index
    %93 = vector.load %arg17[%92, %c0_47] : memref<8x128xf32, #tpu.memory_space<vmem>>, vector<1x128xf32>
    %94 = arith.index_cast %c2_i32_46 : i32 to index
    %c0_48 = arith.constant 0 : index
    %95 = vector.load %arg18[%94, %c0_48] : memref<8x128xf32, #tpu.memory_space<vmem>>, vector<1x128xf32>
    tpu.vector_store %arg18[%94, %c0_48], %93 {strides = array<i32>} : memref<8x128xf32, #tpu.memory_space<vmem>>, vector<1x128xf32>,
    %96 = arith.index_cast %c2_i32_46 : i32 to index
    %97 = memref.load %arg1[%96] : memref<8xi32, #tpu.memory_space<smem>>
    %98 = arith.index_cast %97 : i32 to index
    %c0_49 = arith.constant 0 : index
    %99 = vector.load %arg20[%98, %c0_49] : memref<8x128xf32, #tpu.memory_space<vmem>>, vector<1x128xf32>
    %100 = arith.index_cast %c2_i32_46 : i32 to index
    %c0_50 = arith.constant 0 : index
    %101 = vector.load %arg21[%100, %c0_50] : memref<8x128xf32, #tpu.memory_space<vmem>>, vector<1x128xf32>
    tpu.vector_store %arg21[%100, %c0_50], %99 {strides = array<i32>} : memref<8x128xf32, #tpu.memory_space<vmem>>, vector<1x128xf32>,
    %c3_i32_51 = arith.constant 3 : i32
    %102 = arith.index_cast %c3_i32_51 : i32 to index
    %103 = memref.load %arg0[%102] : memref<8xi32, #tpu.memory_space<smem>>
    %104 = arith.index_cast %103 : i32 to index
    %c0_52 = arith.constant 0 : index
    %105 = vector.load %arg17[%104, %c0_52] : memref<8x128xf32, #tpu.memory_space<vmem>>, vector<1x128xf32>
    %106 = arith.index_cast %c3_i32_51 : i32 to index
    %c0_53 = arith.constant 0 : index
    %107 = vector.load %arg18[%106, %c0_53] : memref<8x128xf32, #tpu.memory_space<vmem>>, vector<1x128xf32>
    tpu.vector_store %arg18[%106, %c0_53], %105 {strides = array<i32>} : memref<8x128xf32, #tpu.memory_space<vmem>>, vector<1x128xf32>,
    %108 = arith.index_cast %c3_i32_51 : i32 to index
    %109 = memref.load %arg1[%108] : memref<8xi32, #tpu.memory_space<smem>>
    %110 = arith.index_cast %109 : i32 to index
    %c0_54 = arith.constant 0 : index
    %111 = vector.load %arg20[%110, %c0_54] : memref<8x128xf32, #tpu.memory_space<vmem>>, vector<1x128xf32>
    %112 = arith.index_cast %c3_i32_51 : i32 to index
    %c0_55 = arith.constant 0 : index
    %113 = vector.load %arg21[%112, %c0_55] : memref<8x128xf32, #tpu.memory_space<vmem>>, vector<1x128xf32>
    tpu.vector_store %arg21[%112, %c0_55], %111 {strides = array<i32>} : memref<8x128xf32, #tpu.memory_space<vmem>>, vector<1x128xf32>,
    %c4_i32_56 = arith.constant 4 : i32
    %114 = arith.index_cast %c4_i32_56 : i32 to index
    %115 = memref.load %arg0[%114] : memref<8xi32, #tpu.memory_space<smem>>
    %116 = arith.index_cast %115 : i32 to index
    %c0_57 = arith.constant 0 : index
    %117 = vector.load %arg17[%116, %c0_57] : memref<8x128xf32, #tpu.memory_space<vmem>>, vector<1x128xf32>
    %118 = arith.index_cast %c4_i32_56 : i32 to index
    %c0_58 = arith.constant 0 : index
    %119 = vector.load %arg18[%118, %c0_58] : memref<8x128xf32, #tpu.memory_space<vmem>>, vector<1x128xf32>
    tpu.vector_store %arg18[%118, %c0_58], %117 {strides = array<i32>} : memref<8x128xf32, #tpu.memory_space<vmem>>, vector<1x128xf32>,
    %120 = arith.index_cast %c4_i32_56 : i32 to index
    %121 = memref.load %arg1[%120] : memref<8xi32, #tpu.memory_space<smem>>
    %122 = arith.index_cast %121 : i32 to index
    %c0_59 = arith.constant 0 : index
    %123 = vector.load %arg20[%122, %c0_59] : memref<8x128xf32, #tpu.memory_space<vmem>>, vector<1x128xf32>
    %124 = arith.index_cast %c4_i32_56 : i32 to index
    %c0_60 = arith.constant 0 : index
    %125 = vector.load %arg21[%124, %c0_60] : memref<8x128xf32, #tpu.memory_space<vmem>>, vector<1x128xf32>
    tpu.vector_store %arg21[%124, %c0_60], %123 {strides = array<i32>} : memref<8x128xf32, #tpu.memory_space<vmem>>, vector<1x128xf32>,
    %c5_i32_61 = arith.constant 5 : i32
    %126 = arith.index_cast %c5_i32_61 : i32 to index
    %127 = memref.load %arg0[%126] : memref<8xi32, #tpu.memory_space<smem>>
    %128 = arith.index_cast %127 : i32 to index
    %c0_62 = arith.constant 0 : index
    %129 = vector.load %arg17[%128, %c0_62] : memref<8x128xf32, #tpu.memory_space<vmem>>, vector<1x128xf32>
    %130 = arith.index_cast %c5_i32_61 : i32 to index
    %c0_63 = arith.constant 0 : index
    %131 = vector.load %arg18[%130, %c0_63] : memref<8x128xf32, #tpu.memory_space<vmem>>, vector<1x128xf32>
    tpu.vector_store %arg18[%130, %c0_63], %129 {strides = array<i32>} : memref<8x128xf32, #tpu.memory_space<vmem>>, vector<1x128xf32>,
    %132 = arith.index_cast %c5_i32_61 : i32 to index
    %133 = memref.load %arg1[%132] : memref<8xi32, #tpu.memory_space<smem>>
    %134 = arith.index_cast %133 : i32 to index
    %c0_64 = arith.constant 0 : index
    %135 = vector.load %arg20[%134, %c0_64] : memref<8x128xf32, #tpu.memory_space<vmem>>, vector<1x128xf32>
    %136 = arith.index_cast %c5_i32_61 : i32 to index
    %c0_65 = arith.constant 0 : index
    %137 = vector.load %arg21[%136, %c0_65] : memref<8x128xf32, #tpu.memory_space<vmem>>, vector<1x128xf32>
    tpu.vector_store %arg21[%136, %c0_65], %135 {strides = array<i32>} : memref<8x128xf32, #tpu.memory_space<vmem>>, vector<1x128xf32>,
    %c6_i32_66 = arith.constant 6 : i32
    %138 = arith.index_cast %c6_i32_66 : i32 to index
    %139 = memref.load %arg0[%138] : memref<8xi32, #tpu.memory_space<smem>>
    %140 = arith.index_cast %139 : i32 to index
    %c0_67 = arith.constant 0 : index
    %141 = vector.load %arg17[%140, %c0_67] : memref<8x128xf32, #tpu.memory_space<vmem>>, vector<1x128xf32>
    %142 = arith.index_cast %c6_i32_66 : i32 to index
    %c0_68 = arith.constant 0 : index
    %143 = vector.load %arg18[%142, %c0_68] : memref<8x128xf32, #tpu.memory_space<vmem>>, vector<1x128xf32>
    tpu.vector_store %arg18[%142, %c0_68], %141 {strides = array<i32>} : memref<8x128xf32, #tpu.memory_space<vmem>>, vector<1x128xf32>,
    %144 = arith.index_cast %c6_i32_66 : i32 to index
    %145 = memref.load %arg1[%144] : memref<8xi32, #tpu.memory_space<smem>>
    %146 = arith.index_cast %145 : i32 to index
    %c0_69 = arith.constant 0 : index
    %147 = vector.load %arg20[%146, %c0_69] : memref<8x128xf32, #tpu.memory_space<vmem>>, vector<1x128xf32>
    %148 = arith.index_cast %c6_i32_66 : i32 to index
    %c0_70 = arith.constant 0 : index
    %149 = vector.load %arg21[%148, %c0_70] : memref<8x128xf32, #tpu.memory_space<vmem>>, vector<1x128xf32>
    tpu.vector_store %arg21[%148, %c0_70], %147 {strides = array<i32>} : memref<8x128xf32, #tpu.memory_space<vmem>>, vector<1x128xf32>,
    %c7_i32_71 = arith.constant 7 : i32
    %150 = arith.index_cast %c7_i32_71 : i32 to index
    %151 = memref.load %arg0[%150] : memref<8xi32, #tpu.memory_space<smem>>
    %152 = arith.index_cast %151 : i32 to index
    %c0_72 = arith.constant 0 : index
    %153 = vector.load %arg17[%152, %c0_72] : memref<8x128xf32, #tpu.memory_space<vmem>>, vector<1x128xf32>
    %154 = arith.index_cast %c7_i32_71 : i32 to index
    %c0_73 = arith.constant 0 : index
    %155 = vector.load %arg18[%154, %c0_73] : memref<8x128xf32, #tpu.memory_space<vmem>>, vector<1x128xf32>
    tpu.vector_store %arg18[%154, %c0_73], %153 {strides = array<i32>} : memref<8x128xf32, #tpu.memory_space<vmem>>, vector<1x128xf32>,
    %156 = arith.index_cast %c7_i32_71 : i32 to index
    %157 = memref.load %arg1[%156] : memref<8xi32, #tpu.memory_space<smem>>
    %158 = arith.index_cast %157 : i32 to index
    %c0_74 = arith.constant 0 : index
    %159 = vector.load %arg20[%158, %c0_74] : memref<8x128xf32, #tpu.memory_space<vmem>>, vector<1x128xf32>
    %160 = arith.index_cast %c7_i32_71 : i32 to index
    %c0_75 = arith.constant 0 : index
    %161 = vector.load %arg21[%160, %c0_75] : memref<8x128xf32, #tpu.memory_space<vmem>>, vector<1x128xf32>
    tpu.vector_store %arg21[%160, %c0_75], %159 {strides = array<i32>} : memref<8x128xf32, #tpu.memory_space<vmem>>, vector<1x128xf32>,
    %c8_i32_76 = arith.constant 8 : i32
    %c0_77 = arith.constant 0 : index
    %c0_78 = arith.constant 0 : index
    %162 = vector.load %arg18[%c0_77, %c0_78] : memref<8x128xf32, #tpu.memory_space<vmem>>, vector<8x128xf32>
    %c0_79 = arith.constant 0 : index
    %c0_80 = arith.constant 0 : index
    %163 = vector.load %arg21[%c0_79, %c0_80] : memref<8x128xf32, #tpu.memory_space<vmem>>, vector<8x128xf32>
    %164 = arith.truncf %162 : vector<8x128xf32> to vector<8x128xbf16>
    %c0_81 = arith.constant 0 : index
    %c0_82 = arith.constant 0 : index
    %165 = vector.load %arg9[%c0_81, %c0_82] : memref<128x128xbf16, #tpu.memory_space<vmem>>, vector<128x128xbf16>
    %cst_83 = arith.constant dense<0.000000e+00> : vector<8x128xf32>
    %166 = tpu.matmul %164, %165, %cst_83 {dimension_numbers = #tpu.dot_dimension_numbers<[1], [0], [0], [1], [0, 0, 1, 1], [], []>} : vector<8x128xbf16>, vector<128x128xbf16>, vector<8x128xf32> -> vector<8x128xf32>
    %167 = arith.addf %163, %166 : vector<8x128xf32>
    %c0_84 = arith.constant 0 : index
    %c0_85 = arith.constant 0 : index
    %168 = vector.load %arg10[%c0_84, %c0_85] : memref<1x128xf32, #tpu.memory_space<vmem>>, vector<1x128xf32>
    %169 = vector.broadcast %168 : vector<1x128xf32> to vector<8x128xf32>
    %170 = arith.addf %167, %169 : vector<8x128xf32>
    %171 = arith.negf %170 : vector<8x128xf32>
    %172 = math.exp %171 : vector<8x128xf32>
    %cst_86 = arith.constant 1.000000e+00 : f32
    %173 = vector.broadcast %cst_86 : f32 to vector<8x128xf32>
    %174 = arith.addf %173, %172 : vector<8x128xf32>
    %175 = arith.divf %173, %174 : vector<8x128xf32>
    %c0_87 = arith.constant 0 : index
    %c0_88 = arith.constant 0 : index
    %176 = vector.load %arg11[%c0_87, %c0_88] : memref<1x128xf32, #tpu.memory_space<vmem>>, vector<1x128xf32>
    %177 = vector.broadcast %176 : vector<1x128xf32> to vector<8x128xf32>
    %178 = arith.mulf %175, %177 : vector<8x128xf32>
    %cst_89 = arith.constant dense<0.000000e+00> : vector<8xf32>
    %179 = vector.multi_reduction <add>, %178, %cst_89 [1] : vector<8x128xf32> to vector<8xf32>
    %180 = vector.shape_cast %179 : vector<8xf32> to vector<8x1xf32>
    %c0_90 = arith.constant 0 : index
    %181 = memref.load %arg3[%c0_90] : memref<1xf32, #tpu.memory_space<smem>>
    %182 = vector.broadcast %181 : f32 to vector<8x1xf32>
    %183 = arith.addf %180, %182 : vector<8x1xf32>
    %184 = tpu.iota {dimensions = array<i32: 0>} : vector<8x8xi32>
    %c0_91 = arith.constant 0 : index
    %c0_92 = arith.constant 0 : index
    %185 = vector.load %arg15[%c0_91, %c0_92] : memref<1x8xi32, #tpu.memory_space<vmem>>, vector<1x8xi32>
    %186 = vector.broadcast %185 : vector<1x8xi32> to vector<8x8xi32>
    %187 = arith.cmpi eq, %186, %184 : vector<8x8xi32>
    %cst_93 = arith.constant 1.000000e+00 : f32
    %cst_94 = arith.constant 0.000000e+00 : f32
    %188 = vector.broadcast %cst_93 : f32 to vector<8x8xf32>
    %189 = vector.broadcast %cst_94 : f32 to vector<8x8xf32>
    %190 = arith.select %187, %188, %189 : vector<8x8xi1>, vector<8x8xf32>
    %191 = arith.truncf %190 : vector<8x8xf32> to vector<8x8xbf16>
    %192 = vector.broadcast %183 : vector<8x1xf32> to vector<8x128xf32>
    %193 = arith.mulf %192, %162 : vector<8x128xf32>
    %194 = arith.truncf %193 : vector<8x128xf32> to vector<8x128xbf16>
    %cst_95 = arith.constant dense<0.000000e+00> : vector<8x128xf32>
    %195 = tpu.matmul %191, %194, %cst_95 {dimension_numbers = #tpu.dot_dimension_numbers<[1], [0], [0], [1], [0, 0, 1, 1], [], []>} : vector<8x8xbf16>, vector<8x128xbf16>, vector<8x128xf32> -> vector<8x128xf32>
    %c0_96 = arith.constant 0 : index
    %c0_97 = arith.constant 0 : index
    %196 = vector.load %arg19[%c0_96, %c0_97] : memref<8x128xf32, #tpu.memory_space<vmem>>, vector<8x128xf32>
    %197 = arith.truncf %196 : vector<8x128xf32> to vector<8x128xbf16>
    %c0_98 = arith.constant 0 : index
    %c0_99 = arith.constant 0 : index
    %198 = vector.load %arg12[%c0_98, %c0_99] : memref<128x128xbf16, #tpu.memory_space<vmem>>, vector<128x128xbf16>
    %cst_100 = arith.constant dense<0.000000e+00> : vector<8x128xf32>
    %199 = tpu.matmul %197, %198, %cst_100 {dimension_numbers = #tpu.dot_dimension_numbers<[1], [0], [0], [1], [0, 0, 1, 1], [], []>} : vector<8x128xbf16>, vector<128x128xbf16>, vector<8x128xf32> -> vector<8x128xf32>
    %200 = arith.truncf %195 : vector<8x128xf32> to vector<8x128xbf16>
    %c0_101 = arith.constant 0 : index
    %c0_102 = arith.constant 0 : index
    %201 = vector.load %arg13[%c0_101, %c0_102] : memref<128x128xbf16, #tpu.memory_space<vmem>>, vector<128x128xbf16>
    %cst_103 = arith.constant dense<0.000000e+00> : vector<8x128xf32>
    %202 = tpu.matmul %200, %201, %cst_103 {dimension_numbers = #tpu.dot_dimension_numbers<[1], [0], [0], [1], [0, 0, 1, 1], [], []>} : vector<8x128xbf16>, vector<128x128xbf16>, vector<8x128xf32> -> vector<8x128xf32>
    %203 = arith.addf %199, %202 : vector<8x128xf32>
    %c0_104 = arith.constant 0 : index
    %c0_105 = arith.constant 0 : index
    %204 = vector.load %arg14[%c0_104, %c0_105] : memref<1x128xf32, #tpu.memory_space<vmem>>, vector<1x128xf32>
    %205 = vector.broadcast %204 : vector<1x128xf32> to vector<8x128xf32>
    %206 = arith.addf %203, %205 : vector<8x128xf32>
    %c0_106 = arith.constant 0 : index
    %c0_107 = arith.constant 0 : index
    %207 = vector.load %arg16[%c0_106, %c0_107] : memref<8x128xf32, #tpu.memory_space<vmem>>, vector<8x128xf32>
    tpu.vector_store %arg16[%c0_106, %c0_107], %206 {strides = array<i32>} : memref<8x128xf32, #tpu.memory_space<vmem>>, vector<8x128xf32>,
    return
  }
}

</mosaic_0001>

<bundles_post_ra>
// kernel: tpu_custom_call.1
= control target key start
LH: loop header
LB: loop body
LE: loop exit
PB: predicated region body
PF: predicated region fallthrough
CT: control target
= control target key end

     0   :  { %s1762_s0 = inlined_call_operand.vmem [shape: s32[8], index: 0, kind: input, shape index: {}]   ;;  %s1763_s1 = inlined_call_operand.hbm [shape: s32[8], index: 1, kind: input, shape index: {}]   ;;  %s1764_s2 = inlined_call_operand.hbm [shape: s32[8], index: 2, kind: input, shape index: {}]   ;;  %s1765_s3 = inlined_call_operand.<no memory space> [shape: f32[1], index: 3, kind: input, shape index: {}]   ;;  %s1766_s4 = inlined_call_operand.vmem [shape: bf16[8,8], index: 4, kind: input, shape index: {}]   ;;  %s1767_s5 = inlined_call_operand.vmem [shape: bf16[8,128], index: 5, kind: input, shape index: {}]   ;;  %s1768_s6 = inlined_call_operand.hbm [shape: bf16[128,128], index: 6, kind: input, shape index: {}]   ;;  %s1769_s7 = inlined_call_operand.vmem [shape: f32[1,128], index: 7, kind: input, shape index: {}]   ;;  %s1770_s8 = inlined_call_operand.hbm [shape: bf16[128,128], index: 8, kind: input, shape index: {}]   ;;  %s1771_s9 = inlined_call_operand.hbm [shape: bf16[128,128], index: 9, kind: input, shape index: {}]   ;;  %s1772_s10 = inlined_call_operand.vmem [shape: f32[1,128], index: 10, kind: input, shape index: {}]   ;;  %s1773_s11 = inlined_call_operand.vmem [shape: f32[1,128], index: 11, kind: input, shape index: {}]   ;;  %s1774_s12 = inlined_call_operand.hbm [shape: bf16[128,128], index: 12, kind: input, shape index: {}]   ;;  %s1775_s13 = inlined_call_operand.hbm [shape: bf16[128,128], index: 13, kind: input, shape index: {}]   ;;  %s1776_s14 = inlined_call_operand.vmem [shape: f32[1,128], index: 14, kind: input, shape index: {}]   ;;  %s1777_s15 = inlined_call_operand.vmem [shape: s32[1,8], index: 15, kind: input, shape index: {}]   ;;  %s1778_s16 = inlined_call_operand.hbm [shape: f32[8,128], index: 16, kind: output, shape index: {}]  }
   0x1   :  { %1779 = sst [smem:[#allocation31_spill]] %s1762_s0 }
   0x2   :  { %22 = vsyncpa [#allocation12], 0 }
   0x3   :  { %23 = vsyncpa [#allocation11], 0 }
   0x4   :  { %24 = vsyncpa [#allocation15], 0 }
   0x5   :  { %25 = vsyncpa [#allocation9], 0 }
   0x6   :  { %26 = vsyncpa [#allocation18], 0 }
   0x7   :  { %27 = vsyncpa [#allocation21], 0 }
   0x8   :  { %28 = vsyncpa [#allocation10], 0  ;;  %s1482_s21 = smov [#allocation17]   ;;  %s1483_s23 = smov [#allocation20]  }
   0x9   :  { %s80_s22 = sshll.u32 %s1482_s21, 4  ;;  %s108_s24 = sshll.u32 %s1483_s23, 4  ;;  %s81_s22 = int_to_ptr.vmem [resolvable:$true] %s80_s22  ;;  %s109_s24 = int_to_ptr.vmem [resolvable:$true] %s108_s24 }
   0xa   :  { %s1328_s25 = scalar_lea.vmem %s81_s22, 1024  ;;  %p1333_p1 = scmp.lt.s32.totalorder %s81_s22, %s81_s22 }
   0xb   :  { %p1329_p0 = scmp.ne.s32.totalorder %s81_s22, %s1328_s25  ;;  %p1334_p2 = scmp.lt.s32.totalorder %s1328_s25, %s1328_s25 }
   0xd   :  { %p1335_p3 = por %p1334_p2, %p1333_p1 }
   0xf   :  { %p1336_p4 = pnand %p1335_p3, %p1329_p0 }
  0x11   :  { %1339 = shalt.err (!%p1336_p4)
}
  0x12   :  { %s1484_s26 = smov 64   ;;  %s1485_s27 = smov 4  }
  0x13   :  { %86 = dma.hbm_to_vmem [thread:$0]  %s1770_s8, 1024, %s81_s22, [#allocation18], %s1484_s26, %s1484_s26, %s1485_s27  }
  0x14   :  { %s1348_s30 = scalar_lea.vmem %s109_s24, 1024  ;;  %p1353_p6 = scmp.lt.s32.totalorder %s109_s24, %s109_s24 }
  0x15   :  { %p1349_p5 = scmp.ne.s32.totalorder %s109_s24, %s1348_s30  ;;  %p1354_p7 = scmp.lt.s32.totalorder %s1348_s30, %s1348_s30 }
  0x17   :  { %p1355_p8 = por %p1354_p7, %p1353_p6 }
  0x19   :  { %p1356_p9 = pnand %p1355_p8, %p1349_p5 }
  0x1b   :  { %1359 = shalt.err (!%p1356_p9)
}
  0x1c   :  { %114 = dma.hbm_to_vmem [thread:$0]  %s1774_s12, 1024, %s109_s24, [#allocation21], %s1484_s26, %s1484_s26, %s1485_s27  }
  0x1d   :  { %s1780_s20 = sld [smem:[#allocation31_spill]] }
  0x23   :  { %s35_s21 = sshll.u32 %s1780_s20, 4  ;;  %s36_s21 = int_to_ptr.vmem [resolvable:$true] %s35_s21 }
  0x24   :  { %s1360_s8 = scalar_lea.vmem %s36_s21, 16  ;;  %p1365_p11 = scmp.lt.s32.totalorder %s36_s21, %s36_s21 }
  0x25   :  { %p1361_p10 = scmp.ne.s32.totalorder %s36_s21, %s1360_s8  ;;  %p1366_p12 = scmp.lt.s32.totalorder %s1360_s8, %s1360_s8 }
  0x27   :  { %p1367_p13 = por %p1366_p12, %p1365_p11 }
  0x29   :  { %p1368_p0 = pnand %p1367_p13, %p1361_p10 }
  0x2b   :  { %1371 = shalt.err (!%p1368_p0)
}
  0x2c   :  { %s1486_s22 = smov [#allocation8]   ;;  %s1487_s23 = smov [#allocation13]  }
  0x2d   :  { %38 = dma.vmem_to_smem %s36_s21, 16, %s1486_s22, [#allocation12]  }
  0x2e   :  { %46 = dma.hbm_to_smem %s1763_s1, 16, %s1487_s23, [#allocation11]  }
  0x2f   :  { %s1488_s12 = smov [#allocation14]   ;;  %s1489_s30 = smov [#allocation16]  }
  0x30   :  { %54 = dma.hbm_to_smem %s1764_s2, 16, %s1488_s12, [#allocation15]  }
  0x31   :  { %s66_s0 = sshll.u32 %s1489_s30, 4  ;;  %s1490_s17 = smov [#allocation19]   ;;  %s67_s0 = int_to_ptr.vmem [resolvable:$true] %s66_s0 }
  0x32   :  { %s92_s18 = sshll.u32 %s1490_s17, 4  ;;  %s1396_s19 = scalar_lea.vmem %s67_s0, 1024  ;;  %s93_s18 = int_to_ptr.vmem [resolvable:$true] %s92_s18 }
  0x33   :  { %p1397_p1 = scmp.ne.s32.totalorder %s67_s0, %s1396_s19  ;;  %p1401_p2 = scmp.lt.s32.totalorder %s67_s0, %s67_s0 }
  0x34   :  { %p1402_p3 = scmp.lt.s32.totalorder %s1396_s19, %s1396_s19 }
  0x36   :  { %p1403_p4 = por %p1402_p3, %p1401_p2 }
  0x38   :  { %p1404_p5 = pnand %p1403_p4, %p1397_p1 }
  0x3a   :  { %1407 = shalt.err (!%p1404_p5)
}
  0x3b   :  { %72 = dma.hbm_to_vmem [thread:$0]  %s1768_s6, 1024, %s67_s0, [#allocation9], %s1484_s26, %s1484_s26, %s1485_s27  }
  0x3c   :  { %s1416_s2 = scalar_lea.vmem %s93_s18, 1024  ;;  %p1421_p7 = scmp.lt.s32.totalorder %s93_s18, %s93_s18 }
  0x3d   :  { %p1417_p6 = scmp.ne.s32.totalorder %s93_s18, %s1416_s2  ;;  %p1422_p8 = scmp.lt.s32.totalorder %s1416_s2, %s1416_s2 }
  0x3f   :  { %p1423_p9 = por %p1422_p8, %p1421_p7 }
  0x41   :  { %p1424_p10 = pnand %p1423_p9, %p1417_p6 }
  0x43   :  { %1427 = shalt.err (!%p1424_p10)
}
  0x44   :  { %98 = dma.hbm_to_vmem [thread:$0]  %s1771_s9, 1024, %s93_s18, [#allocation18], %s1484_s26, %s1484_s26, %s1485_s27  }
  0x45   :  { %s1491_s22 = smov [#allocation22]  }
  0x46   :  { %s120_s23 = sshll.u32 %s1491_s22, 4  ;;  %s121_s23 = int_to_ptr.vmem [resolvable:$true] %s120_s23 }
  0x47   :  { %s1436_s25 = scalar_lea.vmem %s121_s23, 1024  ;;  %p1441_p12 = scmp.lt.s32.totalorder %s121_s23, %s121_s23 }
  0x48   :  { %p1437_p11 = scmp.ne.s32.totalorder %s121_s23, %s1436_s25  ;;  %p1442_p13 = scmp.lt.s32.totalorder %s1436_s25, %s1436_s25 }
  0x4a   :  { %p1443_p0 = por %p1442_p13, %p1441_p12 }
  0x4c   :  { %p1444_p1 = pnand %p1443_p0, %p1437_p11 }
  0x4e   :  { %1447 = shalt.err (!%p1444_p1)
}
  0x4f   :  { %126 = dma.hbm_to_vmem [thread:$0]  %s1775_s13, 1024, %s121_s23, [#allocation21], %s1484_s26, %s1484_s26, %s1485_s27  }
  0x50   :  { %1468 = dma.done.wait [#allocation12], 16  }
  0x51   :  { %1469 = vsyncadd [#allocation12], 4294967280 }
  0x52   :  { %1470 = dma.done.wait [#allocation11], 16  }
  0x53   :  { %1471 = vsyncadd [#allocation11], 4294967280 }
  0x54   :  { %1472 = dma.done.wait [#allocation15], 16  }
  0x55   :  { %1473 = vsyncadd [#allocation15], 4294967280 }
  0x56   :  { %1474 = dma.done.wait [#allocation9], 1024  }
  0x57   :  { %1475 = vsyncadd [#allocation9], 4294966272 }
  0x58   :  { %1476 = dma.done.wait [#allocation18], 2048  }
  0x59   :  { %1477 = vsyncadd [#allocation18], 4294965248 }
  0x5a   :  { %1478 = dma.done.wait [#allocation21], 2048  }
  0x5b   :  { %1479 = vsyncadd [#allocation21], 4294965248 }
  0x5c   :  { %155 = sfence }
  0x5d   :  { %v158_v0 = vld [vmem:[%s1767_s5] sm:$0xf]  ;;  %vm163_vm0 = vcmask 1043456   ;;  %v1492_v1 = vmov 0.0   ;;  %vm1493_vm1 = vmmov 0   ;;  %vm159_vm2 = vcmask 64512  }
  0x5e   :  { %1145 = vmatprep.subr.bf16.mxu1 %v1492_v1  ;;  %v165_v2 = vsel %vm163_vm0, %v158_v0, 0  ;;  %1147 = vmatprep.mubr.msk.bf16.mxu1 %vm1493_vm1, %v1492_v1  ;;  %v157_v3 = vld [vmem:[%s1766_s4] sm:$0xf]  ;;  %v1277_v5 = vld [vmem:[#allocation16 + $0x30] sm:$0xff]   ;;  %v1278_v6 = vld [vmem:[#allocation16 + $0x28] sm:$0xff]   ;;  %s364_s4 = sld [smem:[#allocation14]] }
  0x5f   :  { %1146 = vmatpush3.bf16.msra.mxu1 %v165_v2  ;;  %1157 = vmatprep.subr.bf16.mxu0 %v1492_v1  ;;  %v1276_v4 = vld [vmem:[#allocation16 + $0x38] sm:$0xff]   ;;  %v1279_v7 = vld [vmem:[#allocation16 + $0x20] sm:$0xff]   ;;  %v1281_v9 = vld [vmem:[#allocation16 + $0x10] sm:$0xff]   ;;  %s1035_s5 = sld [smem:[#allocation14 + $0x1]] }
  0x60   :  { %1151 = vmatprep.subr.bf16.mxu1 %v1492_v1  ;;  %1173 = vmatprep.mubr.msk.bf16.mxu0 %vm1493_vm1, %v1492_v1  ;;  %v1280_v8 = vld [vmem:[#allocation16 + $0x18] sm:$0xff]   ;;  %v1282_v10 = vld [vmem:[#allocation16 + $0x8] sm:$0xff]   ;;  %v1283_v17 = vld [vmem:[#allocation16] sm:$0xff]   ;;  %s1036_s27 = sld [smem:[#allocation14 + $0x2]] }
  0x61   :  { %1158 = vmatpush3.bf16.msra.mxu0 %v1276_v4  ;;  %v1285_v18 = vld [vmem:[#allocation17 + $0x38] sm:$0xff]   ;;  %v1287_v19 = vld [vmem:[#allocation17 + $0x30] sm:$0xff]   ;;  %v1289_v20 = vld [vmem:[#allocation17 + $0x28] sm:$0xff]   ;;  %s1667_s24 = sld [smem:[#allocation14 + $0x3]] }
  0x62   :  { %1148 = vmatmul.mubr.msk.bf16.vlgmr.msra.gmra.mxu1 %vm159_vm2, %v157_v3  ;;  %1159 = vmatprep.subr.bf16.mxu0 %v1492_v1  ;;  %v1284_v22 = vld [vmem:[#allocation19 + $0x38] sm:$0xff]   ;;  %v1286_v26 = vld [vmem:[#allocation19 + $0x30] sm:$0xff]   ;;  %v1288_v28 = vld [vmem:[#allocation19 + $0x28] sm:$0xff]   ;;  %s1669_s29 = sld [smem:[#allocation14 + $0x4]] }
  0x63   :  { %1153 = vmatprep.mubr.msk.bf16.mxu1 %vm1493_vm1, %v1492_v1  ;;  %v1290_v29 = vld [vmem:[#allocation19 + $0x20] sm:$0xff]   ;;  %v1292_v31 = vld [vmem:[#allocation19 + $0x18] sm:$0xff]   ;;  %v1294_v33 = vld [vmem:[#allocation19 + $0x10] sm:$0xff]   ;;  %s1671_s30 = sld [smem:[#allocation14 + $0x5]] }
  0x64   :  { %v1291_v30 = vld [vmem:[#allocation17 + $0x20] sm:$0xff]   ;;  %v1293_v32 = vld [vmem:[#allocation17 + $0x18] sm:$0xff]   ;;  %v1295_v34 = vld [vmem:[#allocation17 + $0x10] sm:$0xff]   ;;  %s1673_s0 = sld [smem:[#allocation14 + $0x6]]  ;;  %s365_s6 = scalar_lea.vmem [#allocation2], %s364_s4 }
  0x65   :  { %1160 = vmatpush3.bf16.msra.mxu0 %v1277_v5  ;;  %v1296_v35 = vld [vmem:[#allocation19 + $0x8] sm:$0xff]   ;;  %v1298_v37 = vld [vmem:[#allocation19] sm:$0xff]   ;;  %s1675_s17 = sld [smem:[#allocation14 + $0x7]]  ;;  %v1026_v39 = vld [vmem:[%s1769_s7] ss:$0 sm:$0xff]  ;;  %s369_s7 = scalar_lea.vmem [#allocation2], %s1035_s5 }
  0x66   :  { %1161 = vmatprep.subr.bf16.mxu0 %v1492_v1  ;;  %v1297_v36 = vld [vmem:[#allocation17 + $0x8] sm:$0xff]   ;;  %v1299_v38 = vld [vmem:[#allocation17] sm:$0xff]   ;;  %s1677_s18 = sld [smem:[#allocation8]]  ;;  %s373_s28 = scalar_lea.vmem [#allocation2], %s1036_s27  ;;  %v1300_v0 = vld [vmem:[#allocation20 + $0x38] sm:$0xff]  }
  0x67   :  { %s1679_s19 = sld [smem:[#allocation8 + $0x1]]  ;;  %s377_s9 = scalar_lea.vmem [#allocation2], %s1667_s24  ;;  %v1302_v4 = vld [vmem:[#allocation20 + $0x28] sm:$0xff]   ;;  %v1303_v5 = vld [vmem:[#allocation20 + $0x20] sm:$0xff]  }
  0x68   :  { %s1681_s1 = sld [smem:[#allocation8 + $0x2]]  ;;  %s381_s12 = scalar_lea.vmem [#allocation2], %s1669_s29 }
  0x69   :  { %1162 = vmatpush3.bf16.msra.mxu0 %v1278_v6  ;;  %s1683_s20 = sld [smem:[#allocation8 + $0x3]]  ;;  %s385_s13 = scalar_lea.vmem [#allocation2], %s1671_s30  ;;  %v1304_v6 = vld [vmem:[#allocation20 + $0x18] sm:$0xff]  }
  0x6a   :  { %1163 = vmatprep.subr.bf16.mxu0 %v1492_v1  ;;  %s1688_s8 = sld [smem:[#allocation8 + $0x4]]  ;;  %s389_s26 = scalar_lea.vmem [#allocation2], %s1673_s0 }
  0x6b   :  { %s1690_s22 = sld [smem:[#allocation8 + $0x5]]  ;;  %s393_s4 = scalar_lea.vmem [#allocation2], %s1675_s17 }
  0x6c   :  { %s1692_s23 = sld [smem:[#allocation8 + $0x6]]  ;;  %s504_s5 = scalar_lea.vmem [#allocation2], %s1677_s18 }
  0x6d   :  { %1164 = vmatpush3.bf16.msra.mxu0 %v1279_v7  ;;  %s1694_s25 = sld [smem:[#allocation8 + $0x7]]  ;;  %s512_s27 = scalar_lea.vmem [#allocation2], %s1679_s19  ;;  %v1305_v7 = vld [vmem:[#allocation20 + $0x10] sm:$0xff]  }
  0x6e   :  { %1165 = vmatprep.subr.bf16.mxu0 %v1492_v1  ;;  %s520_s24 = scalar_lea.vmem [#allocation2], %s1681_s1  ;;  %s507_s19 = sld [smem:[#allocation13]] }
  0x6f   :  { %s528_s29 = scalar_lea.vmem [#allocation2], %s1683_s20  ;;  %s1051_s1 = sld [smem:[#allocation13 + $0x1]] }
  0x70   :  { %s536_s30 = scalar_lea.vmem [#allocation2], %s1688_s8  ;;  %s1053_s20 = sld [smem:[#allocation13 + $0x2]] }
  0x71   :  { %1166 = vmatpush3.bf16.msra.mxu0 %v1280_v8  ;;  %s544_s0 = scalar_lea.vmem [#allocation2], %s1690_s22  ;;  %v1306_v8 = vld [vmem:[#allocation20 + $0x8] sm:$0xff]   ;;  %s1055_s2 = sld [smem:[#allocation13 + $0x3]] }
  0x72   :  { %1167 = vmatprep.subr.bf16.mxu0 %v1492_v1  ;;  %s552_s17 = scalar_lea.vmem [#allocation2], %s1692_s23  ;;  %s1057_s21 = sld [smem:[#allocation13 + $0x4]] }
  0x73   :  { %s560_s18 = scalar_lea.vmem [#allocation2], %s1694_s25  ;;  %s1059_s8 = sld [smem:[#allocation13 + $0x5]] }
  0x74   :  { %s1724_s22 = sld [smem:[#allocation13 + $0x6]]  ;;  %s508_s25 = scalar_lea.vmem [#allocation5], %s507_s19 }
  0x75   :  { %1168 = vmatpush3.bf16.msra.mxu0 %v1281_v9  ;;  %v1307_v9 = vld [vmem:[#allocation20] sm:$0xff]   ;;  %s1726_s23 = sld [smem:[#allocation13 + $0x7]] }
  0x76   :  { %1169 = vmatprep.subr.bf16.mxu0 %v1492_v1 }
  0x79   :  { %1170 = vmatpush3.bf16.msra.mxu0 %v1282_v10 }
  0x7a   :  { %1171 = vmatprep.subr.bf16.mxu0 %v1492_v1 }
  0x7d   :  { %1172 = vmatpush3.bf16.msra.mxu0 %v1283_v17 }
  0x7e   :  { %1197 = vmatprep.subr.bf16.mxu0 %v1492_v1 }
 0x122   :  { %v201_v11 = vpop.f32.mrf.mxu1 }
 0x123   :  { %v207_v12 = vpack.c.bf16 %v201_v11, %v201_v11 }
 0x124   :  { %v1149_v13 = vpop.f32.mrf.mxu1 }
 0x125   :  { %v209_v14 = vsel %vm163_vm0, %v207_v12, 0 }
 0x126   :  { %v204_v15 = vpop.f32.mrf.mxu1  ;;  %1152 = vmatpush3.bf16.msra.mxu1 %v209_v14 }
 0x127   :  { %1177 = vmatprep.subr.bf16.mxu1 %v1492_v1 }
 0x128   :  { %v1150_v16 = vpop.f32.mrf.mxu1 }
 0x129   :  { %1154 = vmatmul.mubr.msk.bf16.vlgmr.msra.gmra.mxu1 %vm159_vm2, %v157_v3  ;;  %v1301_v3 = vld [vmem:[#allocation20 + $0x30] sm:$0xff]  }
 0x12a   :  { %1193 = vmatprep.mubr.msk.bf16.mxu1 %vm1493_vm1, %v1492_v1  ;;  %1178 = vmatpush3.bf16.msra.mxu1 %v1285_v18 }
 0x12b   :  { %1179 = vmatprep.subr.bf16.mxu1 %v1492_v1 }
 0x12e   :  { %1180 = vmatpush3.bf16.msra.mxu1 %v1287_v19 }
 0x12f   :  { %1181 = vmatprep.subr.bf16.mxu1 %v1492_v1 }
 0x132   :  { %1182 = vmatpush3.bf16.msra.mxu1 %v1289_v20 }
 0x133   :  { %1183 = vmatprep.subr.bf16.mxu1 %v1492_v1 }
 0x136   :  { %1184 = vmatpush3.bf16.msra.mxu1 %v1291_v30 }
 0x137   :  { %1185 = vmatprep.subr.bf16.mxu1 %v1492_v1 }
 0x13a   :  { %1186 = vmatpush3.bf16.msra.mxu1 %v1293_v32 }
 0x13b   :  { %1187 = vmatprep.subr.bf16.mxu1 %v1492_v1 }
 0x13e   :  { %1188 = vmatpush3.bf16.msra.mxu1 %v1295_v34 }
 0x13f   :  { %1189 = vmatprep.subr.bf16.mxu1 %v1492_v1 }
 0x142   :  { %1190 = vmatpush3.bf16.msra.mxu1 %v1297_v36 }
 0x143   :  { %1191 = vmatprep.subr.bf16.mxu1 %v1492_v1 }
 0x146   :  { %1192 = vmatpush3.bf16.msra.mxu1 %v1299_v38 }
 0x147   :  { %1217 = vmatprep.subr.bf16.mxu1 %v1492_v1 }
 0x1e9   :  { %v245_v21 = vpop.f32.mrf.mxu1 }
 0x1ea   :  { %v251_v23 = vpack.c.bf16 %v245_v21, %v245_v21 }
 0x1eb   :  { %v1155_v24 = vpop.f32.mrf.mxu1 }
 0x1ec   :  { %1174 = vmatmul.mubr.bf16.vlgmr.msra.gmra.mxu0 %v251_v23 }
 0x1ed   :  { %v248_v25 = vpop.f32.mrf.mxu1  ;;  %1198 = vmatpush3.bf16.msra.mxu0 %v1284_v22  ;;  %1213 = vmatprep.mubr.msk.bf16.mxu0 %vm1493_vm1, %v1492_v1 }
 0x1ee   :  { %1199 = vmatprep.subr.bf16.mxu0 %v1492_v1 }
 0x1ef   :  { %v1156_v27 = vpop.f32.mrf.mxu1 }
 0x1f0   :  { %v1072_v27 = vld [vmem:[%s1772_s10] ss:$0 sm:$0xff] }
 0x1f1   :  { %1200 = vmatpush3.bf16.msra.mxu0 %v1286_v26 }
 0x1f2   :  { %1201 = vmatprep.subr.bf16.mxu0 %v1492_v1 }
 0x1f5   :  { %1202 = vmatpush3.bf16.msra.mxu0 %v1288_v28 }
 0x1f6   :  { %1203 = vmatprep.subr.bf16.mxu0 %v1492_v1 }
 0x1f9   :  { %1204 = vmatpush3.bf16.msra.mxu0 %v1290_v29 }
 0x1fa   :  { %1205 = vmatprep.subr.bf16.mxu0 %v1492_v1 }
 0x1fd   :  { %1206 = vmatpush3.bf16.msra.mxu0 %v1292_v31 }
 0x1fe   :  { %1207 = vmatprep.subr.bf16.mxu0 %v1492_v1 }
 0x201   :  { %1208 = vmatpush3.bf16.msra.mxu0 %v1294_v33 }
 0x202   :  { %1209 = vmatprep.subr.bf16.mxu0 %v1492_v1 }
 0x205   :  { %1210 = vmatpush3.bf16.msra.mxu0 %v1296_v35 }
 0x206   :  { %1211 = vmatprep.subr.bf16.mxu0 %v1492_v1 }
 0x209   :  { %1212 = vmatpush3.bf16.msra.mxu0 %v1298_v37  ;;  %v1074_v37 = vld [vmem:[%s1773_s11] ss:$0 sm:$0xff] }
 0x20a   :  { %1243 = vmatprep.subr.bf16.mxu0 %v1492_v1 }
 0x2ac   :  { %v357_v40 = vpop.f32.mrf.mxu0 }
 0x2ad   :  { %v358_v41 = vadd.f32 %v1026_v39, %v357_v40  ;;  %v702_v40 = vlaneseq }
 0x2ae   :  { %v1175_v42 = vpop.f32.mrf.mxu0 }
 0x2af   :  { %363 = vst [vmem:[#allocation2] sm:$0xff] %v358_v41  ;;  %v703_v41 = vshrl.u32 %v702_v40, 7  ;;  %v700_v42 = vstv %s1765_s3 }
 0x2b0   :  { %v360_v43 = vpop.f32.mrf.mxu0 }
 0x2b1   :  { %v1075_v43 = vld [vmem:[%s1777_s15] ss:$0 sm:$0xff]  ;;  %s1494_s15 = smov [#allocation23]  }
 0x2b2   :  { %v1176_v44 = vpop.f32.mrf.mxu0  ;;  %vm709_vm3 = vcmp.eq.s32.totalorder %v1075_v43, %v703_v41 }
 0x2b6   :  { %v366_v45 = vld [vmem:[%s365_s6] sm:$0x1]  ;;  %s516_s6 = scalar_lea.vmem [#allocation5], %s1051_s1 }
 0x2b7   :  { %v370_v46 = vld [vmem:[%s369_s7] sm:$0x1]  ;;  %367 = vst [vmem:[#allocation4] sm:$0x1] %v366_v45  ;;  %s524_s7 = scalar_lea.vmem [#allocation5], %s1053_s20 }
 0x2b8   :  { %v374_v47 = vld [vmem:[%s373_s28] sm:$0x1]  ;;  %371 = vst [vmem:[#allocation4 + $0x1] sm:$0x1] %v370_v46  ;;  %s532_s28 = scalar_lea.vmem [#allocation5], %s1055_s2 }
 0x2b9   :  { %375 = vst [vmem:[#allocation4 + $0x2] sm:$0x1] %v374_v47  ;;  %v378_v48 = vld [vmem:[%s377_s9] sm:$0x1]  ;;  %s540_s9 = scalar_lea.vmem [#allocation5], %s1057_s21  ;;  %v710_v47 = vsel %vm709_vm3, 1.0, %v1492_v1 }
 0x2ba   :  { %v382_v49 = vld [vmem:[%s381_s12] sm:$0x1]  ;;  %379 = vst [vmem:[#allocation4 + $0x3] sm:$0x1] %v378_v48  ;;  %s548_s12 = scalar_lea.vmem [#allocation5], %s1059_s8 }
 0x2bb   :  { %v386_v50 = vld [vmem:[%s385_s13] sm:$0x1]  ;;  %383 = vst [vmem:[#allocation4 + $0x4] sm:$0x1] %v382_v49  ;;  %s556_s13 = scalar_lea.vmem [#allocation5], %s1724_s22 }
 0x2bc   :  { %387 = vst [vmem:[#allocation4 + $0x5] sm:$0x1] %v386_v50  ;;  %v390_v51 = vld [vmem:[%s389_s26] sm:$0x1]  ;;  %s564_s26 = scalar_lea.vmem [#allocation5], %s1726_s23  ;;  %v711_v50 = vpack.c.bf16 %v710_v47, %v710_v47 }
 0x2bd   :  { %v394_v52 = vld [vmem:[%s393_s4] sm:$0x1]  ;;  %391 = vst [vmem:[#allocation4 + $0x6] sm:$0x1] %v390_v51 }
 0x2be   :  { %v505_v53 = vld [vmem:[%s504_s5] sm:$0x1]  ;;  %395 = vst [vmem:[#allocation4 + $0x7] sm:$0x1] %v394_v52  ;;  %v1309_v52 = vld [vmem:[#allocation22 + $0x30] sm:$0xff]  }
 0x2bf   :  { %506 = vst [vmem:[#allocation3] sm:$0x1] %v505_v53  ;;  %v513_v54 = vld [vmem:[%s512_s27] sm:$0x1]  ;;  %v1310_v53 = vld [vmem:[#allocation22 + $0x28] sm:$0xff]  }
 0x2c0   :  { %v521_v55 = vld [vmem:[%s520_s24] sm:$0x1]  ;;  %514 = vst [vmem:[#allocation3 + $0x1] sm:$0x1] %v513_v54  ;;  %v1311_v54 = vld [vmem:[#allocation22 + $0x20] sm:$0xff]  }
 0x2c1   :  { %v529_v56 = vld [vmem:[%s528_s29] sm:$0x1]  ;;  %522 = vst [vmem:[#allocation3 + $0x2] sm:$0x1] %v521_v55 }
 0x2c2   :  { %530 = vst [vmem:[#allocation3 + $0x3] sm:$0x1] %v529_v56  ;;  %v537_v57 = vld [vmem:[%s536_s30] sm:$0x1]  ;;  %v1313_v56 = vld [vmem:[#allocation22 + $0x10] sm:$0xff]  }
 0x2c3   :  { %v545_v58 = vld [vmem:[%s544_s0] sm:$0x1]  ;;  %538 = vst [vmem:[#allocation3 + $0x4] sm:$0x1] %v537_v57  ;;  %v1314_v57 = vld [vmem:[#allocation22 + $0x8] sm:$0xff]  }
 0x2c4   :  { %v553_v59 = vld [vmem:[%s552_s17] sm:$0x1]  ;;  %546 = vst [vmem:[#allocation3 + $0x5] sm:$0x1] %v545_v58  ;;  %v1315_v58 = vld [vmem:[#allocation22] sm:$0xff]   ;;  %s986_s17 = sshll.u32 %s1494_s15, 4  ;;  %s987_s17 = int_to_ptr.vmem [resolvable:$true] %s986_s17 }
 0x2c5   :  { %554 = vst [vmem:[#allocation3 + $0x6] sm:$0x1] %v553_v59  ;;  %v561_v60 = vld [vmem:[%s560_s18] sm:$0x1]  ;;  %v396_v61 = vld [vmem:[#allocation4] sm:$0xff]  ;;  %s1448_s18 = scalar_lea.vmem %s987_s17, 128  ;;  %p1453_p3 = scmp.lt.s32.totalorder %s987_s17, %s987_s17 }
 0x2c6   :  { %562 = vst [vmem:[#allocation3 + $0x7] sm:$0x1] %v561_v60  ;;  %v397_v62 = vpack.c.bf16 %v396_v61, %v396_v61  ;;  %v1308_v51 = vld [vmem:[#allocation22 + $0x38] sm:$0xff]   ;;  %p1449_p2 = scmp.ne.s32.totalorder %s987_s17, %s1448_s18  ;;  %p1454_p4 = scmp.lt.s32.totalorder %s1448_s18, %s1448_s18 }
 0x2c7   :  { %v1312_v55 = vld [vmem:[#allocation22 + $0x18] sm:$0xff]  }
 0x2c8   :  { %1194 = vmatmul.mubr.bf16.vlgmr.msra.gmra.mxu1 %v397_v62  ;;  %p1455_p5 = por %p1454_p4, %p1453_p3 }
 0x2c9   :  { %1219 = vmatprep.mubr.msk.bf16.mxu1 %vm1493_vm1, %v1492_v1 }
 0x2ca   :  { %p1456_p6 = pnand %p1455_p5, %p1449_p2 }
 0x2cd   :  { %v1709_v63 = vld [vmem:[#allocation3] sm:$0xff] }
 0x2ce   :  { %v569_v2 = vpack.c.bf16 %v1709_v63, %v1709_v63 }
 0x2d0   :  { %1214 = vmatmul.mubr.bf16.vlgmr.msra.gmra.mxu0 %v569_v2  ;;  %v1093_v2 = vld [vmem:[%s1776_s14] ss:$0 sm:$0xff] }
 0x2d1   :  { %1244 = vmatpush3.bf16.msra.mxu0 %v1300_v0  ;;  %1259 = vmatprep.mubr.msk.bf16.mxu0 %vm1493_vm1, %v1492_v1 }
 0x2d2   :  { %1245 = vmatprep.subr.bf16.mxu0 %v1492_v1 }
 0x2d5   :  { %1246 = vmatpush3.bf16.msra.mxu0 %v1301_v3 }
 0x2d6   :  { %1247 = vmatprep.subr.bf16.mxu0 %v1492_v1 }
 0x2d9   :  { %1248 = vmatpush3.bf16.msra.mxu0 %v1302_v4 }
 0x2da   :  { %1249 = vmatprep.subr.bf16.mxu0 %v1492_v1 }
 0x2dd   :  { %1250 = vmatpush3.bf16.msra.mxu0 %v1303_v5 }
 0x2de   :  { %1251 = vmatprep.subr.bf16.mxu0 %v1492_v1 }
 0x2e1   :  { %1252 = vmatpush3.bf16.msra.mxu0 %v1304_v6 }
 0x2e2   :  { %1253 = vmatprep.subr.bf16.mxu0 %v1492_v1 }
 0x2e5   :  { %1254 = vmatpush3.bf16.msra.mxu0 %v1305_v7 }
 0x2e6   :  { %1255 = vmatprep.subr.bf16.mxu0 %v1492_v1 }
 0x2e9   :  { %1256 = vmatpush3.bf16.msra.mxu0 %v1306_v8 }
 0x2ea   :  { %1257 = vmatprep.subr.bf16.mxu0 %v1492_v1 }
 0x2ed   :  { %1258 = vmatpush3.bf16.msra.mxu0 %v1307_v9 }
 0x2f0   :  { %1260 = vmatmul.mubr.bf16.vlgmr.msra.gmra.mxu0 %v397_v62 }
 0x388   :  { %v496_v10 = vpop.f32.mrf.mxu1 }
 0x389   :  { %502 = vst [vmem:[#allocation5] sm:$0xff] %v496_v10 }
 0x38a   :  { %v1195_v11 = vpop.f32.mrf.mxu1 }
 0x38c   :  { %v499_v13 = vpop.f32.mrf.mxu1 }
 0x38e   :  { %v1196_v15 = vpop.f32.mrf.mxu1 }
 0x390   :  { %v668_v12 = vpop.f32.mrf.mxu0  ;;  %v509_v17 = vld [vmem:[%s508_s25] sm:$0x1] }
 0x391   :  { %v517_v18 = vld [vmem:[%s516_s6] sm:$0x1]  ;;  %510 = vst [vmem:[#allocation6] sm:$0x1] %v509_v17 }
 0x392   :  { %v1215_v14 = vpop.f32.mrf.mxu0  ;;  %v525_v19 = vld [vmem:[%s524_s7] sm:$0x1]  ;;  %518 = vst [vmem:[#allocation6 + $0x1] sm:$0x1] %v517_v18 }
 0x393   :  { %526 = vst [vmem:[#allocation6 + $0x2] sm:$0x1] %v525_v19  ;;  %v533_v20 = vld [vmem:[%s532_s28] sm:$0x1] }
 0x394   :  { %v671_v16 = vpop.f32.mrf.mxu0  ;;  %v541_v21 = vld [vmem:[%s540_s9] sm:$0x1]  ;;  %534 = vst [vmem:[#allocation6 + $0x3] sm:$0x1] %v533_v20 }
 0x395   :  { %v549_v22 = vld [vmem:[%s548_s12] sm:$0x1]  ;;  %542 = vst [vmem:[#allocation6 + $0x4] sm:$0x1] %v541_v21 }
 0x396   :  { %v1216_v23 = vpop.f32.mrf.mxu0  ;;  %550 = vst [vmem:[#allocation6 + $0x5] sm:$0x1] %v549_v22  ;;  %v557_v24 = vld [vmem:[%s556_s13] sm:$0x1] }
 0x397   :  { %v565_v25 = vld [vmem:[%s564_s26] sm:$0x1]  ;;  %558 = vst [vmem:[#allocation6 + $0x6] sm:$0x1] %v557_v24 }
 0x398   :  { %566 = vst [vmem:[#allocation6 + $0x7] sm:$0x1] %v565_v25 }
 0x39f   :  { %v568_v26 = vld [vmem:[#allocation6] sm:$0xff] }
 0x3a0   :  { %v674_v28 = vadd.f32 %v668_v12, %v568_v26 }
 0x3a2   :  { %v682_v29 = vadd.f32 %v1072_v27, %v674_v28 }
 0x3a4   :  { %v1073_v30 = vmul.f32 -1.442695, %v682_v29 }
 0x3a6   :  { %1316 = vpow2.f32 %v1073_v30 }
 0x3b0   :  { %v965_v31 = vpop.f32.mrf.mxu0 }
 0x3b2   :  { %v1261_v32 = vpop.f32.mrf.mxu0 }
 0x3b3   :  { %v1317_v33 = vpop.eup %1316 }
 0x3b4   :  { %v686_v34 = vadd.f32 1.0, %v1317_v33  ;;  %v968_v35 = vpop.f32.mrf.mxu0 }
 0x3b6   :  { %1318 = vrcp.f32 %v686_v34  ;;  %v1262_v36 = vpop.f32.mrf.mxu0 }
 0x3c3   :  { %v1319_v38 = vpop.eup %1318 }
 0x3c4   :  { %v696_v39 = vmul.f32 %v1319_v38, %v1074_v37 }
 0x3c6   :  { %697 = vadd.xlane.f32.xlu0 %v696_v39 }
 0x44f   :  { %v698_v44 = vpop.xlane.xlu0 %697 }
 0x450   :  { %v701_v45 = vadd.f32 %v700_v42, %v698_v44 }
 0x452   :  { %v712_v46 = vmul.f32 %v701_v45, %v1709_v63 }
 0x454   :  { %v713_v48 = vpack.c.bf16 %v712_v46, %v712_v46 }
 0x456   :  { %v718_v49 = vsel %vm163_vm0, %v713_v48, 0 }
 0x457   :  { %1218 = vmatpush3.bf16.msra.mxu1 %v718_v49 }
 0x458   :  { %1223 = vmatprep.subr.bf16.mxu1 %v1492_v1 }
 0x45a   :  { %1220 = vmatmul.mubr.msk.bf16.vlgmr.msra.gmra.mxu1 %vm159_vm2, %v711_v50 }
 0x45b   :  { %1224 = vmatpush3.bf16.msra.mxu1 %v1308_v51  ;;  %1239 = vmatprep.mubr.msk.bf16.mxu1 %vm1493_vm1, %v1492_v1 }
 0x45c   :  { %1225 = vmatprep.subr.bf16.mxu1 %v1492_v1 }
 0x45f   :  { %1226 = vmatpush3.bf16.msra.mxu1 %v1309_v52 }
 0x460   :  { %1227 = vmatprep.subr.bf16.mxu1 %v1492_v1 }
 0x463   :  { %1228 = vmatpush3.bf16.msra.mxu1 %v1310_v53 }
 0x464   :  { %1229 = vmatprep.subr.bf16.mxu1 %v1492_v1 }
 0x467   :  { %1230 = vmatpush3.bf16.msra.mxu1 %v1311_v54 }
 0x468   :  { %1231 = vmatprep.subr.bf16.mxu1 %v1492_v1 }
 0x46b   :  { %1232 = vmatpush3.bf16.msra.mxu1 %v1312_v55 }
 0x46c   :  { %1233 = vmatprep.subr.bf16.mxu1 %v1492_v1 }
 0x46f   :  { %1234 = vmatpush3.bf16.msra.mxu1 %v1313_v56 }
 0x470   :  { %1235 = vmatprep.subr.bf16.mxu1 %v1492_v1 }
 0x473   :  { %1236 = vmatpush3.bf16.msra.mxu1 %v1314_v57 }
 0x474   :  { %1237 = vmatprep.subr.bf16.mxu1 %v1492_v1 }
 0x477   :  { %1238 = vmatpush3.bf16.msra.mxu1 %v1315_v58 }
 0x51a   :  { %v754_v59 = vpop.f32.mrf.mxu1 }
 0x51b   :  { %v778_v60 = vpack.c.bf16 %v754_v59, %v754_v59 }
 0x51c   :  { %v1221_v61 = vpop.f32.mrf.mxu1 }
 0x51d   :  { %1240 = vmatmul.mubr.bf16.vlgmr.msra.gmra.mxu1 %v778_v60 }
 0x51e   :  { %v757_v62 = vpop.f32.mrf.mxu1 }
 0x520   :  { %v1222_v63 = vpop.f32.mrf.mxu1 }
 0x5dd   :  { %v877_v0 = vpop.f32.mrf.mxu1 }
 0x5de   :  { %v966_v3 = vadd.f32 %v965_v31, %v877_v0 }
 0x5df   :  { %v1241_v4 = vpop.f32.mrf.mxu1 }
 0x5e0   :  { %v978_v5 = vadd.f32 %v1093_v2, %v966_v3 }
 0x5e1   :  { %v880_v1 = vpop.f32.mrf.mxu1 }
 0x5e2   :  { %979 = vst [vmem:[#allocation23] sm:$0xff] %v978_v5 }
 0x5e3   :  { %v1242_v6 = vpop.f32.mrf.mxu1 }
 0x5e4   :  { %1459 = shalt.err (!%p1456_p6)
}
 0x5e5   :  { %989 = dma.vmem_to_hbm [thread:$0]  %s987_s17, 128, %s1778_s16, [#allocation10]  }
 0x5e6   :  { %1480 = dma.done.wait [#allocation10], 128  }
 0x5e7   :  { %1481 = vsyncadd [#allocation10], 4294967168 }
 0x5e8   :  { %993 = vsyncpa [#allocation9], 1 }
 0x5e9   :  { %994 = vsyncpa [#allocation18], 1 }
 0x5ea   :  { %995 = vsyncpa [#allocation21], 1 }
 0x5eb   :  { %996 = vsyncpa [#allocation10], 1 }
 0x5ec   :  { %997 = vsyncpa [#allocation11], 1 }
 0x5ed   :  { %998 = vsyncpa [#allocation15], 1 }
 0x5ee   :  { %999 = vsyncpa [#allocation12], 1 }

</bundles_post_ra>
